<compile_context>
chip_gen: v5e
topology: v5e:2x2
jax: 0.10.0
libtpu: 0.0.40
codegen_flags: <defaults>
</compile_context>

<pallas_src>
import functools

import jax
import jax.numpy as jnp
from jax import lax
from jax.experimental import pallas as pl
from jax.experimental.pallas import tpu as pltpu

_EPS = 1e-5


def _round_up(a, b):
    return (a + b - 1) // b * b


def _basic_block_kernel(*refs, wp, lout, cin_p, identity_shortcut):
    """Fused residual block for one batch tile (NB images folded into lanes).

    xf_ref : (1, Cin_p, lout + tail) bf16 -- flattened, spatially padded images
    w1_ref : (Cout, 9*Cin_p)  bf16        -- 3x3 conv, BN1 scale folded, tap-major
    b1_ref : (Cout, 1)        f32         -- folded BN1 bias
    w2_ref : (Cout, Cout)     bf16        -- 1x1 conv, BN2 scale folded
    b2_ref : (Cout, 1)        f32
    ws_ref : (Cout, Cin_p)    bf16        -- 1x1 shortcut conv (only if projection)
    bs_ref : (Cout, 1)        f32
    out_ref: (1, Cout, lout)  bf16
    """
    if identity_shortcut:
        xf_ref, w1_ref, b1_ref, w2_ref, b2_ref, out_ref = refs
        ws_ref = bs_ref = None
    else:
        xf_ref, w1_ref, b1_ref, w2_ref, b2_ref, ws_ref, bs_ref, out_ref = refs

    # im2col: the 9 taps of the 3x3 conv are static lane-offset slices of the
    # (already bf16) flattened padded image; one sublane concat -> one MXU matmul.
    pieces = [xf_ref[0, :, ky * wp + kx: ky * wp + kx + lout]
              for ky in range(3) for kx in range(3)]            # bf16 (Cin_p, lout)
    xcol = jnp.concatenate(pieces, axis=0)                      # bf16 (9*Cin_p, lout)

    # residual branch: conv3x3(+BN1) -> ReLU -> conv1x1(+BN2), all on the MXU,
    # f32 accumulation.
    res = jnp.dot(w1_ref[...], xcol, preferred_element_type=jnp.float32)
    res = jnp.maximum(res + b1_ref[...], 0.0)
    res = jnp.dot(w2_ref[...], res.astype(jnp.bfloat16),
                  preferred_element_type=jnp.float32)
    res = res + b2_ref[...]

    # shortcut branch: reuse the center-tap rows already living inside xcol.
    center = xcol[4 * cin_p:5 * cin_p, :]                       # bf16 (Cin_p, lout)
    if identity_shortcut:
        sc = center[:res.shape[0], :].astype(jnp.float32)       # skip-add in f32
    else:
        sc = jnp.dot(ws_ref[...], center,
                     preferred_element_type=jnp.float32) + bs_ref[...]

    out_ref[0] = jnp.maximum(res + sc, 0.0).astype(out_ref.dtype)


def _fold_bn(gamma, beta, mean, var):
    scale = gamma / jnp.sqrt(var + _EPS)
    bias = beta - mean * scale
    return scale, bias


def _vmem_bytes_per_step(cin_p, cout, nb, seg, wp):
    """Rough per-grid-step VMEM footprint (bytes), double-buffered I/O included."""
    lout = nb * seg
    tail = _round_up(2 * wp + 2, 128)
    sin = lout + tail
    bf16, f32 = 2, 4
    in_blk = cin_p * sin * bf16
    out_blk = cout * lout * bf16
    xcol = 9 * cin_p * lout * bf16
    inter = 2 * cout * lout * f32               # f32 res / shortcut temporaries
    wgt = (cout * 9 * cin_p + cout * cout + cout * cin_p) * bf16 + 3 * cout * f32
    return 2 * (in_blk + out_blk) + xcol + inter + wgt


def _choose_nb(n, batch_tile, cin_p, cout, seg, wp, budget):
    nb = max(1, min(n, batch_tile))
    # keep >= 2 grid steps when possible: pipelining + v7x's second TensorCore.
    while nb > 1 and -(-n // nb) < 2:
        nb -= 1
    # fit the per-step footprint into the (generation-dependent) VMEM budget.
    while nb > 1 and _vmem_bytes_per_step(cin_p, cout, nb, seg, wp) > budget:
        nb -= 1
    return nb


def basic_block_pallas(x_nchw, p, *, batch_tile=8):
    """Forward pass of BasicBlock (stride=1, eval-mode BN) via one Pallas kernel.

    Returns bf16 NCHW activations (bf16 is also the kernel-level I/O dtype).
    """
    n, cin, h, w = x_nchw.shape
    cout = p["w1"].shape[0]
    identity = (cin == cout)           # PyTorch: projection only when in != expansion*out

    cin_p = _round_up(cin, 16)         # bf16 packs 2 rows/sublane -> align to 16
    wp = w + 2
    lp = (h + 2) * wp                  # flattened padded image length
    lvalid = h * wp                    # rows kept (first w cols of each row)
    seg = _round_up(lp, 128)           # per-image lane segment
    tail = _round_up(2 * wp + 2, 128)  # slack so the largest tap slice stays in-block

    # generation-aware VMEM budgeting (v5e/v6e 128 MiB, v7x 64 MiB).
    try:
        cap = int(getattr(pltpu.get_tpu_info(), "vmem_capacity_bytes", 64 << 20))
    except Exception:  # pragma: no cover - conservative fallback
        cap = 64 << 20

    nb = _choose_nb(n, batch_tile, cin_p, cout, seg, wp, budget=int(0.7 * cap))
    ntiles = -(-n // nb)
    npad = ntiles * nb
    lout = nb * seg
    sin = lout + tail

    # ---- activations: NCHW -> bf16 channel-major flattened/padded lanes ----------
    xb = x_nchw.astype(jnp.bfloat16)
    xp = jnp.pad(xb, ((0, npad - n), (0, cin_p - cin), (1, 1), (1, 1)))
    xf = xp.reshape(npad, cin_p, lp)
    xf = jnp.pad(xf, ((0, 0), (0, 0), (0, seg - lp)))
    xf = xf.reshape(ntiles, nb, cin_p, seg).transpose(0, 2, 1, 3)
    xf = xf.reshape(ntiles, cin_p, lout)
    xf = jnp.pad(xf, ((0, 0), (0, 0), (0, tail)))                  # (ntiles, Cin_p, sin)

    # ---- weights: fold BN scales in f32, tap-major layout, bf16 for the MXU ------
    s1, b1 = _fold_bn(p["g1"], p["b1"], p["m1"], p["v1"])
    s2, b2 = _fold_bn(p["g2"], p["b2"], p["m2"], p["v2"])
    w1t = jnp.transpose(p["w1"], (0, 2, 3, 1)) * s1[:, None, None, None]
    w1t = jnp.pad(w1t, ((0, 0), (0, 0), (0, 0), (0, cin_p - cin)))
    w1m = w1t.reshape(cout, 9 * cin_p).astype(jnp.bfloat16)
    b1v = b1.reshape(cout, 1).astype(jnp.float32)
    w2m = (p["w2"][:, :, 0, 0] * s2[:, None]).astype(jnp.bfloat16)
    b2v = b2.reshape(cout, 1).astype(jnp.float32)

    args = [xf, w1m, b1v, w2m, b2v]
    in_specs = [
        pl.BlockSpec((1, cin_p, sin), lambda i: (i, 0, 0)),
        pl.BlockSpec((cout, 9 * cin_p), lambda i: (0, 0)),
        pl.BlockSpec((cout, 1), lambda i: (0, 0)),
        pl.BlockSpec((cout, cout), lambda i: (0, 0)),
        pl.BlockSpec((cout, 1), lambda i: (0, 0)),
    ]
    if not identity:
        ss, bs = _fold_bn(p["gs"], p["bs"], p["ms"], p["vs"])
        wsm = jnp.pad(p["ws"][:, :, 0, 0] * ss[:, None],
                      ((0, 0), (0, cin_p - cin))).astype(jnp.bfloat16)
        bsv = bs.reshape(cout, 1).astype(jnp.float32)
        args += [wsm, bsv]
        in_specs += [pl.BlockSpec((cout, cin_p), lambda i: (0, 0)),
                     pl.BlockSpec((cout, 1), lambda i: (0, 0))]

    est = _vmem_bytes_per_step(cin_p, cout, nb, seg, wp)
    vmem_limit = min(max(2 * est + (1 << 20), 32 << 20), int(0.9 * cap))

    kernel = functools.partial(_basic_block_kernel, wp=wp, lout=lout,
                               cin_p=cin_p, identity_shortcut=identity)

    out = pl.pallas_call(
        kernel,
        out_shape=jax.ShapeDtypeStruct((ntiles, cout, lout), jnp.bfloat16),
        grid=(ntiles,),
        in_specs=in_specs,
        out_specs=pl.BlockSpec((1, cout, lout), lambda i: (i, 0, 0)),
        compiler_params=pltpu.CompilerParams(
            dimension_semantics=("parallel",),
            vmem_limit_bytes=vmem_limit),
    )(*args)

    # ---- lanes -> NCHW (bf16) -----------------------------------------------------
    out = out.reshape(ntiles, cout, nb, seg).transpose(0, 2, 1, 3)
    out = out.reshape(npad, cout, seg)[:n, :, :lvalid]
    out = out.reshape(n, cout, h, wp)[..., :w]
    return out


# ------------------------------ reference & setup ----------------------------------
def torch_reference(x, p):
    """Pure-JAX mirror of BasicBlock.forward (eval-mode BatchNorm), NCHW, f32."""
    dn = ("NCHW", "OIHW", "NCHW")
    prec = lax.Precision.HIGHEST

    def bn(y, g, b, m, v):
        g, b, m, v = (t[None, :, None, None] for t in (g, b, m, v))
        return g * (y - m) / jnp.sqrt(v + _EPS) + b

    y = lax.conv_general_dilated(x, p["w1"], (1, 1), ((1, 1), (1, 1)),
                                 dimension_numbers=dn, precision=prec)
    y = bn(y, p["g1"], p["b1"], p["m1"], p["v1"])
    y = jnp.maximum(y, 0.0)
    y = lax.conv_general_dilated(y, p["w2"], (1, 1), ((0, 0), (0, 0)),
                                 dimension_numbers=dn, precision=prec)
    y = bn(y, p["g2"], p["b2"], p["m2"], p["v2"])

    cin, cout = x.shape[1], p["w1"].shape[0]
    if cin != cout:
        sc = lax.conv_general_dilated(x, p["ws"], (1, 1), ((0, 0), (0, 0)),
                                      dimension_numbers=dn, precision=prec)
        sc = bn(sc, p["gs"], p["bs"], p["ms"], p["vs"])
    else:
        sc = x
    return jnp.maximum(y + sc, 0.0)


def init_params(key, cin, cout):
    ks = jax.random.split(key, 6)

    def bn_params(k):
        k1, k2, k3, k4 = jax.random.split(k, 4)
        gamma = 1.0 + 0.1 * jax.random.normal(k1, (cout,), jnp.float32)
        beta = 0.1 * jax.random.normal(k2, (cout,), jnp.float32)
        mean = 0.1 * jax.random.normal(k3, (cout,), jnp.float32)
        var = 0.5 + 0.5 * jnp.abs(jax.random.normal(k4, (cout,), jnp.float32))
        return gamma, beta, mean, var

    p = {
        "w1": 0.2 * jax.random.normal(ks[0], (cout, cin, 3, 3), jnp.float32),
        "w2": 0.2 * jax.random.normal(ks[1], (cout, cout, 1, 1), jnp.float32),
        "ws": 0.2 * jax.random.normal(ks[2], (cout, cin, 1, 1), jnp.float32),
    }
    p["g1"], p["b1"], p["m1"], p["v1"] = bn_params(ks[3])
    p["g2"], p["b2"], p["m2"], p["v2"] = bn_params(ks[4])
    p["gs"], p["bs"], p["ms"], p["vs"] = bn_params(ks[5])
    return p


if __name__ == "__main__":
    N, CIN, COUT, H, W = 2, 4, 8, 16, 16
    key = jax.random.PRNGKey(0)
    kx, kp = jax.random.split(key)
    x = jax.random.normal(kx, (N, CIN, H, W), jnp.float32)
    params = init_params(kp, CIN, COUT)

    out = jax.block_until_ready(basic_block_pallas(x, params))
    ref = jax.block_until_ready(torch_reference(x, params))

    assert out.shape == (N, COUT, H, W), out.shape
    # bf16 activations + bf16 MXU operands (f32 accumulation) vs an f32 HIGHEST
    # reference -> relaxed tolerance.
    out_f32 = out.astype(jnp.float32)
    if not jnp.allclose(out_f32, ref, atol=1e-1, rtol=1e-1):
        max_err = float(jnp.max(jnp.abs(out_f32 - ref)))
        raise AssertionError(f"Pallas output mismatch vs reference, max_err={max_err}")
    print("KERNEL_OK")
</pallas_src>

<mosaic_0001>
module attributes {stable_mosaic.version = 11 : i64} {
  func.func @_basic_block_kernel(%arg0: i32, %arg1: memref<1x16x512xbf16, #tpu.memory_space<vmem>>, %arg2: memref<8x144xbf16, #tpu.memory_space<vmem>>, %arg3: memref<8x1xf32, #tpu.memory_space<vmem>>, %arg4: memref<8x8xbf16, #tpu.memory_space<vmem>>, %arg5: memref<8x1xf32, #tpu.memory_space<vmem>>, %arg6: memref<8x16xbf16, #tpu.memory_space<vmem>>, %arg7: memref<8x1xf32, #tpu.memory_space<vmem>>, %arg8: memref<1x8x384xbf16, #tpu.memory_space<vmem>>) attributes {dimension_semantics = [#tpu.dimension_semantics<parallel>], iteration_bounds = array<i64: 2>, scalar_prefetch = 0 : i64, scratch_operands = 0 : i64, tpu.core_type = #tpu.core_type<tc>, window_params = [{transform_indices = @transform_0, window_bounds = array<i64: 1, 16, 512>}, {pipeline_mode = #tpu.pipeline_mode<synchronous>, transform_indices = @transform_1, window_bounds = array<i64: 8, 144>}, {pipeline_mode = #tpu.pipeline_mode<synchronous>, transform_indices = @transform_2, window_bounds = array<i64: 8, 1>}, {pipeline_mode = #tpu.pipeline_mode<synchronous>, transform_indices = @transform_3, window_bounds = array<i64: 8, 8>}, {pipeline_mode = #tpu.pipeline_mode<synchronous>, transform_indices = @transform_4, window_bounds = array<i64: 8, 1>}, {pipeline_mode = #tpu.pipeline_mode<synchronous>, transform_indices = @transform_5, window_bounds = array<i64: 8, 16>}, {pipeline_mode = #tpu.pipeline_mode<synchronous>, transform_indices = @transform_6, window_bounds = array<i64: 8, 1>}, {transform_indices = @transform_7, window_bounds = array<i64: 1, 8, 384>}]} {
    %c0 = arith.constant 0 : index
    %c0_0 = arith.constant 0 : index
    %c0_1 = arith.constant 0 : index
    %0 = vector.load %arg1[%c0, %c0_0, %c0_1] : memref<1x16x512xbf16, #tpu.memory_space<vmem>>, vector<1x16x384xbf16>
    %1 = vector.shape_cast %0 : vector<1x16x384xbf16> to vector<16x384xbf16>
    %c0_2 = arith.constant 0 : index
    %c0_3 = arith.constant 0 : index
    %c1 = arith.constant 1 : index
    %2 = vector.load %arg1[%c0_2, %c0_3, %c1] : memref<1x16x512xbf16, #tpu.memory_space<vmem>>, vector<1x16x384xbf16>
    %3 = vector.shape_cast %2 : vector<1x16x384xbf16> to vector<16x384xbf16>
    %c0_4 = arith.constant 0 : index
    %c0_5 = arith.constant 0 : index
    %c2 = arith.constant 2 : index
    %4 = vector.load %arg1[%c0_4, %c0_5, %c2] : memref<1x16x512xbf16, #tpu.memory_space<vmem>>, vector<1x16x384xbf16>
    %5 = vector.shape_cast %4 : vector<1x16x384xbf16> to vector<16x384xbf16>
    %c0_6 = arith.constant 0 : index
    %c0_7 = arith.constant 0 : index
    %c18 = arith.constant 18 : index
    %6 = vector.load %arg1[%c0_6, %c0_7, %c18] : memref<1x16x512xbf16, #tpu.memory_space<vmem>>, vector<1x16x384xbf16>
    %7 = vector.shape_cast %6 : vector<1x16x384xbf16> to vector<16x384xbf16>
    %c0_8 = arith.constant 0 : index
    %c0_9 = arith.constant 0 : index
    %c19 = arith.constant 19 : index
    %8 = vector.load %arg1[%c0_8, %c0_9, %c19] : memref<1x16x512xbf16, #tpu.memory_space<vmem>>, vector<1x16x384xbf16>
    %9 = vector.shape_cast %8 : vector<1x16x384xbf16> to vector<16x384xbf16>
    %c0_10 = arith.constant 0 : index
    %c0_11 = arith.constant 0 : index
    %c20 = arith.constant 20 : index
    %10 = vector.load %arg1[%c0_10, %c0_11, %c20] : memref<1x16x512xbf16, #tpu.memory_space<vmem>>, vector<1x16x384xbf16>
    %11 = vector.shape_cast %10 : vector<1x16x384xbf16> to vector<16x384xbf16>
    %c0_12 = arith.constant 0 : index
    %c0_13 = arith.constant 0 : index
    %c36 = arith.constant 36 : index
    %12 = vector.load %arg1[%c0_12, %c0_13, %c36] : memref<1x16x512xbf16, #tpu.memory_space<vmem>>, vector<1x16x384xbf16>
    %13 = vector.shape_cast %12 : vector<1x16x384xbf16> to vector<16x384xbf16>
    %c0_14 = arith.constant 0 : index
    %c0_15 = arith.constant 0 : index
    %c37 = arith.constant 37 : index
    %14 = vector.load %arg1[%c0_14, %c0_15, %c37] : memref<1x16x512xbf16, #tpu.memory_space<vmem>>, vector<1x16x384xbf16>
    %15 = vector.shape_cast %14 : vector<1x16x384xbf16> to vector<16x384xbf16>
    %c0_16 = arith.constant 0 : index
    %c0_17 = arith.constant 0 : index
    %c38 = arith.constant 38 : index
    %16 = vector.load %arg1[%c0_16, %c0_17, %c38] : memref<1x16x512xbf16, #tpu.memory_space<vmem>>, vector<1x16x384xbf16>
    %17 = vector.shape_cast %16 : vector<1x16x384xbf16> to vector<16x384xbf16>
    %18 = tpu.concatenate %1, %3, %5, %7, %9, %11, %13, %15, %17 in 0 : vector<16x384xbf16>, vector<16x384xbf16>, vector<16x384xbf16>, vector<16x384xbf16>, vector<16x384xbf16>, vector<16x384xbf16>, vector<16x384xbf16>, vector<16x384xbf16>, vector<16x384xbf16> -> vector<144x384xbf16>
    %c0_18 = arith.constant 0 : index
    %c0_19 = arith.constant 0 : index
    %19 = vector.load %arg2[%c0_18, %c0_19] : memref<8x144xbf16, #tpu.memory_space<vmem>>, vector<8x144xbf16>
    %cst = arith.constant dense<0.000000e+00> : vector<8x384xf32>
    %20 = tpu.matmul %19, %18, %cst {dimension_numbers = #tpu.dot_dimension_numbers<[1], [0], [0], [1], [0, 0, 1, 1], [], []>} : vector<8x144xbf16>, vector<144x384xbf16>, vector<8x384xf32> -> vector<8x384xf32>
    %c0_20 = arith.constant 0 : index
    %c0_21 = arith.constant 0 : index
    %21 = vector.load %arg3[%c0_20, %c0_21] : memref<8x1xf32, #tpu.memory_space<vmem>>, vector<8x1xf32>
    %22 = vector.broadcast %21 : vector<8x1xf32> to vector<8x384xf32>
    %23 = arith.addf %20, %22 : vector<8x384xf32>
    %cst_22 = arith.constant 0.000000e+00 : f32
    %24 = vector.broadcast %cst_22 : f32 to vector<8x384xf32>
    %25 = arith.maximumf %23, %24 : vector<8x384xf32>
    %c0_23 = arith.constant 0 : index
    %c0_24 = arith.constant 0 : index
    %26 = vector.load %arg4[%c0_23, %c0_24] : memref<8x8xbf16, #tpu.memory_space<vmem>>, vector<8x8xbf16>
    %27 = arith.truncf %25 : vector<8x384xf32> to vector<8x384xbf16>
    %cst_25 = arith.constant dense<0.000000e+00> : vector<8x384xf32>
    %28 = tpu.matmul %26, %27, %cst_25 {dimension_numbers = #tpu.dot_dimension_numbers<[1], [0], [0], [1], [0, 0, 1, 1], [], []>} : vector<8x8xbf16>, vector<8x384xbf16>, vector<8x384xf32> -> vector<8x384xf32>
    %c0_26 = arith.constant 0 : index
    %c0_27 = arith.constant 0 : index
    %29 = vector.load %arg5[%c0_26, %c0_27] : memref<8x1xf32, #tpu.memory_space<vmem>>, vector<8x1xf32>
    %30 = vector.broadcast %29 : vector<8x1xf32> to vector<8x384xf32>
    %31 = arith.addf %28, %30 : vector<8x384xf32>
    %32 = vector.extract_strided_slice %18 {offsets = [64, 0], sizes = [16, 384], strides = [1, 1]} : vector<144x384xbf16> to vector<16x384xbf16>
    %c0_28 = arith.constant 0 : index
    %c0_29 = arith.constant 0 : index
    %33 = vector.load %arg6[%c0_28, %c0_29] : memref<8x16xbf16, #tpu.memory_space<vmem>>, vector<8x16xbf16>
    %cst_30 = arith.constant dense<0.000000e+00> : vector<8x384xf32>
    %34 = tpu.matmul %33, %32, %cst_30 {dimension_numbers = #tpu.dot_dimension_numbers<[1], [0], [0], [1], [0, 0, 1, 1], [], []>} : vector<8x16xbf16>, vector<16x384xbf16>, vector<8x384xf32> -> vector<8x384xf32>
    %c0_31 = arith.constant 0 : index
    %c0_32 = arith.constant 0 : index
    %35 = vector.load %arg7[%c0_31, %c0_32] : memref<8x1xf32, #tpu.memory_space<vmem>>, vector<8x1xf32>
    %36 = vector.broadcast %35 : vector<8x1xf32> to vector<8x384xf32>
    %37 = arith.addf %34, %36 : vector<8x384xf32>
    %38 = arith.addf %31, %37 : vector<8x384xf32>
    %cst_33 = arith.constant 0.000000e+00 : f32
    %39 = vector.broadcast %cst_33 : f32 to vector<8x384xf32>
    %40 = arith.maximumf %38, %39 : vector<8x384xf32>
    %41 = arith.truncf %40 : vector<8x384xf32> to vector<8x384xbf16>
    %c0_34 = arith.constant 0 : index
    %c0_35 = arith.constant 0 : index
    %c0_36 = arith.constant 0 : index
    %42 = vector.load %arg8[%c0_34, %c0_35, %c0_36] : memref<1x8x384xbf16, #tpu.memory_space<vmem>>, vector<1x8x384xbf16>
    %43 = vector.shape_cast %42 : vector<1x8x384xbf16> to vector<8x384xbf16>
    %44 = vector.shape_cast %41 : vector<8x384xbf16> to vector<1x8x384xbf16>
    tpu.vector_store %arg8[%c0_34, %c0_35, %c0_36], %44 {strides = array<i32>} : memref<1x8x384xbf16, #tpu.memory_space<vmem>>, vector<1x8x384xbf16>,
    return
  }
  func.func @transform_0(%arg0: i32) -> (i32, i32, i32) {
    %c0_i32 = arith.constant 0 : i32
    %c0_i32_0 = arith.constant 0 : i32
    %c0_i32_1 = arith.constant 0 : i32
    return %arg0, %c0_i32, %c0_i32_0 : i32, i32, i32
  }
  func.func @transform_1(%arg0: i32) -> (i32, i32) {
    %c0_i32 = arith.constant 0 : i32
    %c0_i32_0 = arith.constant 0 : i32
    %c0_i32_1 = arith.constant 0 : i32
    return %c0_i32, %c0_i32_0 : i32, i32
  }
  func.func @transform_2(%arg0: i32) -> (i32, i32) {
    %c0_i32 = arith.constant 0 : i32
    %c0_i32_0 = arith.constant 0 : i32
    %c0_i32_1 = arith.constant 0 : i32
    return %c0_i32, %c0_i32_0 : i32, i32
  }
  func.func @transform_3(%arg0: i32) -> (i32, i32) {
    %c0_i32 = arith.constant 0 : i32
    %c0_i32_0 = arith.constant 0 : i32
    %c0_i32_1 = arith.constant 0 : i32
    return %c0_i32, %c0_i32_0 : i32, i32
  }
  func.func @transform_4(%arg0: i32) -> (i32, i32) {
    %c0_i32 = arith.constant 0 : i32
    %c0_i32_0 = arith.constant 0 : i32
    %c0_i32_1 = arith.constant 0 : i32
    return %c0_i32, %c0_i32_0 : i32, i32
  }
  func.func @transform_5(%arg0: i32) -> (i32, i32) {
    %c0_i32 = arith.constant 0 : i32
    %c0_i32_0 = arith.constant 0 : i32
    %c0_i32_1 = arith.constant 0 : i32
    return %c0_i32, %c0_i32_0 : i32, i32
  }
  func.func @transform_6(%arg0: i32) -> (i32, i32) {
    %c0_i32 = arith.constant 0 : i32
    %c0_i32_0 = arith.constant 0 : i32
    %c0_i32_1 = arith.constant 0 : i32
    return %c0_i32, %c0_i32_0 : i32, i32
  }
  func.func @transform_7(%arg0: i32) -> (i32, i32, i32) {
    %c0_i32 = arith.constant 0 : i32
    %c0_i32_0 = arith.constant 0 : i32
    %c0_i32_1 = arith.constant 0 : i32
    return %arg0, %c0_i32, %c0_i32_0 : i32, i32, i32
  }
}

</mosaic_0001>

<bundles_post_ra>
// kernel: tpu_custom_call.1
= control target key start
LH: loop header
LB: loop body
LE: loop exit
PB: predicated region body
PF: predicated region fallthrough
CT: control target
= control target key end

     0   :  { %12 = vsyncpa [#allocation3], 0  ;;  %s1248_s0 = inlined_call_operand.hbm [shape: bf16[2,16,512], index: 0, kind: input, shape index: {}]   ;;  %s1249_s1 = inlined_call_operand.vmem [shape: bf16[8,144], index: 1, kind: input, shape index: {}]   ;;  %s1250_s2 = inlined_call_operand.vmem [shape: f32[8,1], index: 2, kind: input, shape index: {}]   ;;  %s1251_s3 = inlined_call_operand.vmem [shape: bf16[8,8], index: 3, kind: input, shape index: {}]   ;;  %s1252_s4 = inlined_call_operand.vmem [shape: f32[8,1], index: 4, kind: input, shape index: {}]   ;;  %s1253_s5 = inlined_call_operand.vmem [shape: bf16[8,16], index: 5, kind: input, shape index: {}]   ;;  %s1254_s6 = inlined_call_operand.vmem [shape: f32[8,1], index: 6, kind: input, shape index: {}]   ;;  %s1255_s7 = inlined_call_operand.hbm [shape: bf16[2,8,384], index: 7, kind: output, shape index: {}]  }
   0x1   :  { %14 = vsyncpa [#allocation3 + $0x1], 0 }
   0x2   :  { %15 = vsyncpa [#allocation4], 0 }
   0x3   :  { %17 = vsyncpa [#allocation4 + $0x1], 0  ;;  %s1034_s24 = smov 0   ;;  %s1036_s25 = smov 0  }
   0x4   :  { %s1038_s26 = smov 0   ;;  %s1040_s27 = smov 0  }
   0x5 LB: > { %s1055_s28 = sadd.s32 4294967295, %s981_s27   ;;  %s767_s29 = sadd.s32 4294967294, %s981_s27   ;;  %s981_s27 = sphi %s1040_s27, %s1267_s27   ;;  %s977_s26 = sphi %s1038_s26, %s1266_s26   ;;  %s973_s25 = sphi %s1036_s25, %s1265_s25   ;;  %s969_s24 = sphi %s1034_s24, %s1264_s24  }
   0x6   : > { %s1059_s30 = sadd.s32 1, %s981_s27   ;;  %s30_s8 = sadd.s32 1, %s977_s26 }
   0x7   : > { %s27_s9 = ssub.s32 %s981_s27, %s1059_s30  ;;  %p37_p0 = scmp.ne.s32.totalorder %s977_s26, %s973_s25 }
   0x8   : > { %p28_p1 = scmp.eq.s32.totalorder %s27_s9, 0  ;;  %p38_p2 = scmp.eq.s32.totalorder %s981_s27, 0 }
   0x9   : > { %p43_p3 = scmp.ne.s32.totalorder %s973_s25, %s969_s24  ;;  %p44_p4 = scmp.eq.s32.totalorder %s1055_s28, 0 }
   0xa   : > { %s1071_s10 = scalar_select %p28_p1, %s977_s26, %s30_s8  }
   0xb   : > { %p1073_p5 = por %p38_p2, %p37_p0  ;;  %p1077_p6 = por %p44_p4, %p43_p3 }
   0xc   : > { %1256 = sst [smem:[#allocation8_spill]] %s1071_s10  ;;  %p193_p7 = scmp.eq.s32.totalorder %s1055_s28, 1 }
   0xd   : > { %p199_p8 = scmp.eq.s32.totalorder %s767_s29, 1  ;;  %p837_p10 = scmp.lt.s32.totalorder %s981_s27, 2 }
   0xe   : > { %p1084_p11 = por %p193_p7, %p37_p0  ;;  %s237_s15 = sand.u32 1, %s977_s26  }
   0xf   : > { %p1088_p12 = por %p199_p8, %p43_p3  ;;  %s815_s16 = sshll.u32 %s981_s27, 5 }
  0x10   : > { %s770_s17 = sshll.u32 %s237_s15, 5  ;;  %s246_s20 = scalar_lea.hbm %s1248_s0, %s815_s16 }
  0x11   : > { %s247_s21 = sshll.u32 %s246_s20, 4  ;;  %s241_s22 = scalar_lea.vmem [#allocation2], %s770_s17  ;;  %s248_s21 = int_to_ptr.hbm [resolvable:$true] %s247_s21 }
  0x12   : > { %s249_s23 = sshll.u32 %s241_s22, 4  ;;  %p1099_p13 = pnand %p837_p10, %p1073_p5  ;;  %s250_s23 = int_to_ptr.vmem [resolvable:$true] %s249_s23 }
  0x13   : > { %p773_p0 = scmp.ge.s32.totalorder %s981_s27, 1  ;;  %p257_p1 = scmp.lt.s32.totalorder %s981_s27, 3 }
  0x14   : > { %s238_s8 = scalar_lea.sflag [#allocation3], %s237_s15  ;;  %s885_s9 = sshra.s32 %s248_s21, 4  ;;  %s886_s9 = int_to_ptr.hbm [resolvable:$true] %s885_s9 }
  0x15   : > { %s887_s10 = scalar_lea.hbm %s886_s9, 32  ;;  %p889_p3 = pneg %p1099_p13 }
  0x16   : > { %p888_p2 = scmp.ne.s32.totalorder %s886_s9, %s887_s10  ;;  %s892_s11 = scalar_lea.hbm %s1248_s0, 64 }
  0x17   : > { %p893_p5 = scmp.lt.s32.totalorder %s886_s9, %s1248_s0  ;;  %p894_p8 = scmp.lt.s32.totalorder %s892_s11, %s887_s10 }
  0x18   : > { %p890_p4 = pnand %p889_p3, %p888_p2 }
  0x19   : > { %p895_p10 = por %p894_p8, %p893_p5 }
  0x1a   : > { %p891_p7 = pneg %p890_p4 }
  0x1c   : > { %p896_p9 = pnand %p895_p10, %p891_p7 }
  0x1e   : > { %899 = shalt.err (!%p896_p9)
}
  0x1f   : > { %s983_s15 = smov 256   ;;  %s984_s20 = smov 16  }
  0x20   : > { %832 = dma.hbm_to_vmem [thread:$0]  (!%p1099_p13), %s248_s21, 512, %s250_s23, %s238_s8, %s983_s15, %s983_s15, %s984_s20  }
  0x21   : > { %p258_p2 = pnand %p773_p0, %p257_p1 }
  0x22   : > { %s1120_s22 = sand.u32 (!%p258_p2), 1, %s973_s25  }
  0x23   : > { %261 = sbr.rel (%p258_p2) target bundleno = 549 (0x225), region = 48  ;;  %s774_s10 = sshll.u32 (!%p258_p2), %s1120_s22, 5 }
  0x24   : > { %s264_s9 = scalar_lea.sflag (!%p258_p2), [#allocation3], %s1120_s22  ;;  %s1124_s16 = scalar_lea.vmem (!%p258_p2), [#allocation2], %s774_s10 }
  0x28   : > { %960 = dma.done.wait (%p1077_p6), %s264_s9, 512  }
  0x29   : > { %962 = vsyncadd (%p1077_p6), %s264_s9, 4294966784  ;;  %v797_v0 = vld [vmem:[%s1124_s16 + $0x8] sm:$0xf]  ;;  %v822_v1 = vld [vmem:[%s1124_s16 + $0x14] sm:$0xf0]  ;;  %s985_s21 = smov 91  }
  0x2a   : > { %v789_v2 = vld [vmem:[%s1124_s16] sm:$0xf]  ;;  %v798_v3 = vor.u32 %v822_v1, %v797_v0  ;;  %v821_v4 = vld [vmem:[%s1124_s16 + $0xc] sm:$0xf0]  ;;  %v819_v5 = vld [vmem:[%s1124_s16 + $0x4] sm:$0xf] }
  0x2b   : > { %v791_v6 = vld [vmem:[%s1124_s16 + $0x10] sm:$0xf0]  ;;  %v790_v7 = vor.u32 %v821_v4, %v789_v2  ;;  %s986_s12 = smov 92   ;;  %s987_s23 = smov 108   ;;  %v820_v9 = vld [vmem:[%s1124_s16 + $0xc] sm:$0xf] }
  0x2c   : > { %v794_v8 = vor.u32 %v819_v5, %v791_v6  ;;  %434 = vrot.lane.b32.xlu1 %v798_v3, %s985_s21  ;;  %s988_s29 = smov 109   ;;  %s989_s8 = smov 110   ;;  %v799_v10 = vld [vmem:[%s1124_s16 + $0x18] sm:$0xf0]  ;;  %vm438_vm0 = vcmask 744448   ;;  %vm423_vm1 = vcmask 752640  }
  0x2d   : > { %430 = vrot.lane.b32.xlu0 %v790_v7, %s985_s21  ;;  %v802_v11 = vor.u32 %v820_v9, %v799_v10  ;;  %s990_s17 = smov 126   ;;  %s991_s11 = smov 127   ;;  %vm408_vm2 = vcmask 883712   ;;  %vm393_vm3 = vcmask 891904   ;;  %vm378_vm4 = vcmask 900096   ;;  %v460_v50 = vld [vmem:[%s1249_s1] sm:$0xff] }
  0x2e   : > { %417 = vrot.lane.b32.xlu2 %v794_v8, %s986_s12  ;;  %s992_s18 = smov 90   ;;  %vm363_vm5 = vcmask 1031168   ;;  %vm348_vm6 = vcmask 1039360   ;;  %v816_v49 = vld [vmem:[%s1124_s16 + $0x4] sm:$0xf]  ;;  %v468_v58 = vunpack.c.l.b16 %v460_v50  ;;  %v469_v62 = vunpack.c.h.b16 %v460_v50  ;;  %s824_s19 = smul.u32 12, %s1055_s28 }
  0x2f   : > { %v779_v52 = vld [vmem:[%s1124_s16 + $0x10] sm:$0xf0]  ;;  %v777_v53 = vld [vmem:[%s1124_s16] sm:$0xf]  ;;  %v817_v54 = vld [vmem:[%s1124_s16 + $0xc] sm:$0xf0] }
  0x30   : > { %v782_v59 = vor.u32 %v816_v49, %v779_v52  ;;  %v778_v60 = vor.u32 %v817_v54, %v777_v53  ;;  %v470_v61 = vpack.c.b16 %v468_v58, %v468_v58  ;;  %vm453_vm7 = vcmask 736256   ;;  %v461_v6 = vld [vmem:[%s1250_s2] sm:$0xff]  ;;  %s692_s10 = scalar_lea.hbm %s1255_s7, %s824_s19 }
  0x31   : > { %v471_v2 = vpack.c.b16 %v469_v62, %v469_v62  ;;  %vm473_vm8 = vcmask 130048   ;;  %vm572_vm9 = vcmask 1043456   ;;  %vm568_vm10 = vcmask 64512  }
  0x34   : > { %415 = vrot.lane.b32.xlu1 %v790_v7, %s986_s12 }
  0x35   : > { %432 = vrot.lane.b32.xlu0 %v794_v8, %s985_s21 }
  0x36   : > { %419 = vrot.lane.b32.xlu2 %v798_v3, %s986_s12 }
  0x3c   : > { %402 = vrot.lane.b32.xlu1 %v794_v8, %s987_s23 }
  0x3d   : > { %400 = vrot.lane.b32.xlu0 %v790_v7, %s987_s23 }
  0x3e   : > { %404 = vrot.lane.b32.xlu2 %v798_v3, %s987_s23 }
  0x44   : > { %387 = vrot.lane.b32.xlu1 %v794_v8, %s988_s29 }
  0x45   : > { %385 = vrot.lane.b32.xlu0 %v790_v7, %s988_s29 }
  0x46   : > { %389 = vrot.lane.b32.xlu2 %v798_v3, %s988_s29 }
  0x4c   : > { %372 = vrot.lane.b32.xlu1 %v794_v8, %s989_s8 }
  0x4d   : > { %370 = vrot.lane.b32.xlu0 %v790_v7, %s989_s8 }
  0x4e   : > { %374 = vrot.lane.b32.xlu2 %v798_v3, %s989_s8 }
  0x54   : > { %355 = vrot.lane.b32.xlu1 %v790_v7, %s990_s17 }
  0x55   : > { %436 = vrot.lane.b32.xlu0 %v802_v11, %s985_s21  ;;  %s696_s21 = sshll.u32 %s692_s10, 4  ;;  %s697_s21 = int_to_ptr.hbm [resolvable:$true] %s696_s21 }
  0x56   : > { %357 = vrot.lane.b32.xlu2 %v794_v8, %s990_s17 }
  0x5c   : > { %421 = vrot.lane.b32.xlu1 %v802_v11, %s986_s12  ;;  %s929_s12 = sshra.s32 %s697_s21, 4  ;;  %s930_s12 = int_to_ptr.hbm [resolvable:$true] %s929_s12 }
  0x5d   : > { %359 = vrot.lane.b32.xlu0 %v798_v3, %s990_s17  ;;  %s931_s28 = scalar_lea.hbm %s930_s12, 12  ;;  %p936_p0 = scmp.lt.s32.totalorder %s930_s12, %s1255_s7 }
  0x5e   : > { %340 = vrot.lane.b32.xlu2 %v790_v7, %s991_s11  ;;  %p932_p6 = scmp.ne.s32.totalorder %s930_s12, %s931_s28 }
  0x60   : > { %p933_p9 = pnand %p932_p6, %p1084_p11 }
  0x62   : > { %p934_p13 = pneg %p933_p9 }
  0x64   : > { %344 = vrot.lane.b32.xlu1 %v798_v3, %s991_s11 }
  0x65   : > { %342 = vrot.lane.b32.xlu0 %v794_v8, %s991_s11 }
  0x66   : > { %406 = vrot.lane.b32.xlu2 %v802_v11, %s987_s23 }
  0x6c   : > { %449 = vrot.lane.b32.xlu1 %v798_v3, %s992_s18 }
  0x6d   : > { %447 = vrot.lane.b32.xlu0 %v794_v8, %s992_s18 }
  0x6e   : > { %391 = vrot.lane.b32.xlu2 %v802_v11, %s988_s29 }
  0x74   : > { %376 = vrot.lane.b32.xlu1 %v802_v11, %s989_s8  ;;  %s935_s8 = scalar_lea.hbm %s1255_s7, 24 }
  0x75   : > { %445 = vrot.lane.b32.xlu0 %v790_v7, %s992_s18  ;;  %v993_v7 = vmov 0   ;;  %p937_p1 = scmp.lt.s32.totalorder %s935_s8, %s931_s28 }
  0x76   : > { %361 = vrot.lane.b32.xlu2 %v802_v11, %s990_s17  ;;  %884 = vset.pattern.permute.xlu1 %v993_v7 }
  0x77   : > { %882 = vset.pattern.permute.xlu2 %v993_v7  ;;  %883 = vset.pattern.permute.xlu0 %v993_v7  ;;  %p938_p3 = por %p937_p1, %p936_p0 }
  0x79   : > { %p939_p4 = pnand %p938_p3, %p934_p13 }
  0x7c   : > { %451 = vrot.lane.b32.xlu1 %v802_v11, %s992_s18 }
  0x7d   : > { %346 = vrot.lane.b32.xlu0 %v802_v11, %s991_s11  ;;  %s823_s11 = smul.u32 12, %s1120_s22 }
  0x7e   : > { %464 = vperm.xlu2 %882, %v461_v6  }
  0x7f   : > { %s298_s18 = scalar_lea.vmem [#allocation5], %s823_s11 }
  0x80   : > { %s694_s9 = sshll.u32 %s298_s18, 4  ;;  %s695_s9 = int_to_ptr.vmem [resolvable:$true] %s694_s9 }
  0x88   : > { %v418_v12 = vpop.permute.xlu2 %417 }
  0x90   : > { %v420_v13 = vpop.permute.xlu2 %419 }
  0x91   : > { %v425_v24 = vsel %vm423_vm1, %v418_v12, %v420_v13 }
  0x98   : > { %v405_v14 = vpop.permute.xlu2 %404 }
  0x9e   : > { %v435_v15 = vpop.permute.xlu1 %434 }
  0x9f   : > { %v431_v16 = vpop.permute.xlu0 %430 }
  0xa0   : > { %v1138_v17 = vpop.permute.xlu2 %389 }
  0xa6   : > { %v416_v18 = vpop.permute.xlu1 %415 }
  0xa7   : > { %v433_v20 = vpop.permute.xlu0 %432  ;;  %v424_v23 = vsel %vm423_vm1, %v416_v18, %v418_v12  ;;  %v818_v18 = vld [vmem:[%s1124_s16 + $0x14] sm:$0xf0] }
  0xa8   : > { %v1140_v19 = vpop.permute.xlu2 %374  ;;  %v439_v21 = vsel %vm438_vm0, %v431_v16, %v433_v20  ;;  %v440_v22 = vsel %vm438_vm0, %v433_v20, %v435_v15  ;;  %v785_v16 = vld [vmem:[%s1124_s16 + $0x8] sm:$0xf]  ;;  %s681_s16 = scalar_lea.sflag [#allocation4], %s1120_s22 }
  0xa9   : > { %477 = vmatpush.bf16.msra.mxu0 %v439_v21  ;;  %503 = vmatpush.bf16.msra.mxu2 %v440_v22  ;;  %v786_v21 = vor.u32 %v818_v18, %v785_v16 }
  0xad   : > { %478 = vmatpush.bf16.msra.mxu0 %v424_v23  ;;  %504 = vmatpush.bf16.msra.mxu2 %v425_v24 }
  0xae   : > { %v403_v25 = vpop.permute.xlu1 %402 }
  0xaf   : > { %v401_v27 = vpop.permute.xlu0 %400  ;;  %v410_v28 = vsel %vm408_vm2, %v403_v25, %v405_v14 }
  0xb0   : > { %v358_v26 = vpop.permute.xlu2 %357  ;;  %v409_v29 = vsel %vm408_vm2, %v401_v27, %v403_v25 }
  0xb1   : > { %479 = vmatpush.bf16.msra.mxu0 %v409_v29  ;;  %505 = vmatpush.bf16.msra.mxu2 %v410_v28 }
  0xb6   : > { %v388_v30 = vpop.permute.xlu1 %387 }
  0xb7   : > { %v386_v32 = vpop.permute.xlu0 %385  ;;  %v1150_v33 = vsel %vm393_vm3, %v388_v30, %v1138_v17 }
  0xb8   : > { %v341_v31 = vpop.permute.xlu2 %340  ;;  %v1153_v34 = vsel %vm393_vm3, %v386_v32, %v388_v30  ;;  %506 = vmatpush.bf16.msra.mxu2 %v1150_v33 }
  0xb9   : > { %480 = vmatpush.bf16.msra.mxu0 %v1153_v34 }
  0xbe   : > { %v373_v35 = vpop.permute.xlu1 %372 }
  0xbf   : > { %v371_v37 = vpop.permute.xlu0 %370  ;;  %v380_v38 = vsel %vm378_vm4, %v373_v35, %v1140_v19 }
  0xc0   : > { %v407_v36 = vpop.permute.xlu2 %406  ;;  %v379_v39 = vsel %vm378_vm4, %v371_v37, %v373_v35  ;;  %507 = vmatpush.bf16.msra.mxu2 %v380_v38 }
  0xc1   : > { %v411_v40 = vsel %vm408_vm2, %v405_v14, %v407_v36  ;;  %481 = vmatpush.bf16.msra.mxu0 %v379_v39 }
  0xc6   : > { %v356_v41 = vpop.permute.xlu1 %355 }
  0xc7   : > { %v437_v42 = vpop.permute.xlu0 %436  ;;  %v364_v43 = vsel %vm363_vm5, %v356_v41, %v358_v26  ;;  %v558_v41 = vld [vmem:[%s1251_s3] sm:$0xf] }
  0xc8   : > { %482 = vmatpush.bf16.msra.mxu0 %v364_v43  ;;  %v441_v44 = vsel %vm438_vm0, %v435_v15, %v437_v42  ;;  %v392_v10 = vpop.permute.xlu2 %391  ;;  %v622_v42 = vld [vmem:[%s1254_s6] sm:$0xff] }
  0xc9   : > { %v396_v11 = vsel %vm393_vm3, %v1138_v17, %v392_v10  ;;  %v562_v43 = vld [vmem:[%s1252_s4] sm:$0xff]  ;;  %625 = vperm.xlu1 %884, %v622_v42  }
  0xca   : > { %565 = vperm.xlu0 %883, %v562_v43  }
  0xce   : > { %v422_v45 = vpop.permute.xlu1 %421 }
  0xcf   : > { %v360_v46 = vpop.permute.xlu0 %359  ;;  %v426_v47 = vsel %vm423_vm1, %v420_v13, %v422_v45 }
  0xd0   : > { %v365_v48 = vsel %vm363_vm5, %v358_v26, %v360_v46  ;;  %v362_v13 = vpop.permute.xlu2 %361 }
  0xd1   : > { %508 = vmatpush.bf16.msra.mxu2 %v365_v48  ;;  %v366_v14 = vsel %vm363_vm5, %v360_v46, %v362_v13 }
  0xd6   : > { %v345_v51 = vpop.permute.xlu1 %344 }
  0xd7   : > { %v343_v55 = vpop.permute.xlu0 %342 }
  0xd8   : > { %v349_v56 = vsel %vm348_vm6, %v341_v31, %v343_v55  ;;  %v350_v57 = vsel %vm348_vm6, %v343_v55, %v345_v51  ;;  %v465_v22 = vpop.permute.xlu2 %464 }
  0xd9   : > { %483 = vmatpush.bf16.msra.mxu0 %v349_v56  ;;  %509 = vmatpush.bf16.msra.mxu2 %v350_v57 }
  0xdd   : > { %510 = vmatpush.bf16.msra.mxu2 %v782_v59  ;;  %484 = vmatpush.bf16.msra.mxu0 %v778_v60 }
  0xde   : > { %v450_v63 = vpop.permute.xlu1 %449 }
  0xdf   : > { %v448_v0 = vpop.permute.xlu0 %447 }
  0xe0   : > { %v455_v1 = vsel %vm453_vm7, %v448_v0, %v450_v63  ;;  %511 = vmatmul.bf16.vlgmr.msra.gmra.mxu2 %v470_v61  ;;  %485 = vmatmul.bf16.vlgmr.msra.gmra.mxu0 %v470_v61 }
  0xe1   : > { %523 = vmatpush.bf16.msra.mxu3 %v455_v1 }
  0xe4   : > { %804 = vmatmul.msk.bf16.vlgmr.msra.gmra.mxu3 %vm473_vm8, %v471_v2 }
  0xe6   : > { %v377_v3 = vpop.permute.xlu1 %376 }
  0xe7   : > { %v446_v4 = vpop.permute.xlu0 %445  ;;  %v381_v12 = vsel %vm378_vm4, %v1140_v19, %v377_v3  ;;  %v621_v19 = vld [vmem:[%s1253_s5] sm:$0xf] }
  0xe8   : > { %v454_v5 = vsel %vm453_vm7, %v446_v4, %v448_v0 }
  0xe9   : > { %497 = vmatpush.bf16.msra.mxu1 %v454_v5 }
  0xec   : > { %803 = vmatmul.msk.bf16.vlgmr.msra.gmra.mxu1 %vm473_vm8, %v471_v2 }
  0xed   : > { %529 = vmatpush.bf16.msrb.mxu1 %v441_v44 }
  0xee   : > { %v452_v8 = vpop.permute.xlu1 %451 }
  0xef   : > { %v456_v9 = vsel %vm453_vm7, %v450_v63, %v452_v8  ;;  %v347_v15 = vpop.permute.xlu0 %346 }
  0xf0   : > { %549 = vmatpush.bf16.msrb.mxu3 %v456_v9  ;;  %v351_v20 = vsel %vm348_vm6, %v345_v51, %v347_v15 }
  0xf1   : > { %530 = vmatpush.bf16.msrb.mxu1 %v426_v47 }
  0xf4   : > { %805 = vmatmul.msk.bf16.vlgmr.msrb.gmra.mxu3 %vm473_vm8, %v471_v2 }
  0xf5   : > { %531 = vmatpush.bf16.msrb.mxu1 %v411_v40 }
  0xf9   : > { %532 = vmatpush.bf16.msrb.mxu1 %v396_v11 }
  0xfd   : > { %533 = vmatpush.bf16.msrb.mxu1 %v381_v12 }
 0x101   : > { %534 = vmatpush.bf16.msrb.mxu1 %v366_v14 }
 0x105   : > { %535 = vmatpush.bf16.msrb.mxu1 %v351_v20 }
 0x109   : > { %536 = vmatpush.bf16.msrb.mxu1 %v786_v21 }
 0x10c   : > { %537 = vmatmul.bf16.vlgmr.msrb.gmra.mxu1 %v470_v61 }
 0x10d   : > { %638 = vmatpush.bf16.msra.mxu1 %v1153_v34 }
 0x11c   : > { %809 = vmatmul.msk.bf16.vlgmr.msra.gmra.mxu1 %vm473_vm8, %v621_v19 }
 0x13b   : > { %v626_v57 = vpop.permute.xlu1 %625 }
 0x13c   : > { %v566_v58 = vpop.permute.xlu0 %565 }
 0x15d   : > { %v486_v17 = vpop.f32.mrf.mxu0 }
 0x15e   : > { %v487_v26 = vadd.f32 %v486_v17, %v465_v22 }
 0x163   : > { %v512_v23 = vpop.f32.mrf.mxu2 }
 0x164   : > { %v513_v24 = vadd.f32 %v512_v23, %v465_v22 }
 0x165   : > { %v488_v25 = vpop.f32.mrf.mxu0 }
 0x167   : > { %v525_v27 = vpop.f32.mrf.mxu3 }
 0x168   : > { %v526_v28 = vadd.f32 %v525_v27, %v513_v24 }
 0x169   : > { %v499_v29 = vpop.f32.mrf.mxu1 }
 0x16a   : > { %v556_v30 = vmax.f32 %v526_v28, 0.0  ;;  %v500_v31 = vadd.f32 %v499_v29, %v487_v26 }
 0x16b   : > { %v514_v32 = vpop.f32.mrf.mxu2 }
 0x16c   : > { %v560_v34 = vpack.c.bf16 %v556_v30, %v556_v30  ;;  %v555_v35 = vmax.f32 %v500_v31, 0.0 }
 0x16e   : > { %v559_v36 = vpack.c.bf16 %v555_v35, %v555_v35  ;;  %v577_v37 = vsel %vm572_vm9, %v560_v34, 0 }
 0x16f   : > { %602 = vmatpush.bf16.msrb.mxu0 %v577_v37  ;;  %v527_v38 = vpop.f32.mrf.mxu3 }
 0x170   : > { %v574_v39 = vsel %vm572_vm9, %v559_v36, 0 }
 0x171   : > { %589 = vmatpush.bf16.msra.mxu3 %v574_v39  ;;  %v501_v40 = vpop.f32.mrf.mxu1 }
 0x172   : > { %807 = vmatmul.msk.bf16.vlgmr.msrb.gmra.mxu0 %vm568_vm10, %v558_v41 }
 0x173   : > { %664 = vmatpush.bf16.msra.mxu0 %v396_v11 }
 0x174   : > { %806 = vmatmul.msk.bf16.vlgmr.msra.gmra.mxu3 %vm568_vm10, %v558_v41 }
 0x175   : > { %651 = vmatpush.bf16.msrb.mxu3 %v1150_v33 }
 0x177   : > { %v551_v44 = vpop.f32.mrf.mxu3 }
 0x17f   : > { %v553_v45 = vpop.f32.mrf.mxu3 }
 0x182   : > { %811 = vmatmul.msk.bf16.vlgmr.msra.gmra.mxu0 %vm473_vm8, %v621_v19 }
 0x184   : > { %810 = vmatmul.msk.bf16.vlgmr.msrb.gmra.mxu3 %vm473_vm8, %v621_v19 }
 0x189   : > { %v538_v33 = vpop.f32.mrf.mxu1 }
 0x18a   : > { %v539_v46 = vadd.f32 %v538_v33, %v465_v22 }
 0x18c   : > { %v552_v47 = vadd.f32 %v551_v44, %v539_v46 }
 0x18e   : > { %v557_v48 = vmax.f32 %v552_v47, 0.0 }
 0x190   : > { %v561_v49 = vpack.c.bf16 %v557_v48, %v557_v48 }
 0x191   : > { %v540_v50 = vpop.f32.mrf.mxu1 }
 0x192   : > { %v580_v51 = vsel %vm572_vm9, %v561_v49, 0 }
 0x193   : > { %615 = vmatpush.bf16.msrb.mxu2 %v580_v51 }
 0x196   : > { %808 = vmatmul.msk.bf16.vlgmr.msrb.gmra.mxu2 %vm568_vm10, %v558_v41 }
 0x199   : > { %v640_v52 = vpop.f32.mrf.mxu1 }
 0x19a   : > { %v641_v62 = vadd.f32 %v640_v52, %v626_v57 }
 0x1a1   : > { %v642_v53 = vpop.f32.mrf.mxu1 }
 0x1ef   : > { %v604_v54 = vpop.f32.mrf.mxu0 }
 0x1f0   : > { %v605_v63 = vadd.f32 %v604_v54, %v566_v58 }
 0x1f7   : > { %v591_v55 = vpop.f32.mrf.mxu3  ;;  %v606_v56 = vpop.f32.mrf.mxu0 }
 0x1f8   : > { %v592_v61 = vadd.f32 %v591_v55, %v566_v58 }
 0x1fa   : > { %v670_v0 = vadd.f32 %v641_v62, %v592_v61 }
 0x1fc   : > { %v673_v4 = vmax.f32 %v670_v0, 0.0 }
 0x1ff   : > { %v593_v59 = vpop.f32.mrf.mxu3  ;;  %v666_v60 = vpop.f32.mrf.mxu0 }
 0x200   : > { %v667_v9 = vadd.f32 %v666_v60, %v626_v57 }
 0x207   : > { %v653_v1 = vpop.f32.mrf.mxu3  ;;  %v668_v2 = vpop.f32.mrf.mxu0 }
 0x208   : > { %v654_v3 = vadd.f32 %v653_v1, %v626_v57 }
 0x20a   : > { %v671_v5 = vadd.f32 %v654_v3, %v605_v63 }
 0x20c   : > { %v674_v6 = vmax.f32 %v671_v5, 0.0 }
 0x20e   : > { %v676_v7 = vpack.c.bf16 %v674_v6, %v673_v4 }
 0x20f   : > { %v655_v8 = vpop.f32.mrf.mxu3 }
 0x210   : > { %678 = vst [vmem:[%s298_s18] sm:$0xff] %v676_v7 }
 0x219   : > { %v617_v10 = vpop.f32.mrf.mxu2 }
 0x21a   : > { %v618_v11 = vadd.f32 %v617_v10, %v566_v58 }
 0x21c   : > { %v672_v12 = vadd.f32 %v667_v9, %v618_v11 }
 0x21e   : > { %v675_v13 = vmax.f32 %v672_v12, 0.0 }
 0x220   : > { %v677_v14 = vpack.c.bf16 %v675_v13, %v675_v13 }
 0x221   : > { %v619_v15 = vpop.f32.mrf.mxu2 }
 0x222   : > { %679 = vst [vmem:[%s298_s18 + $0x8] sm:$0xf] %v677_v14 }
 0x223   : > { %942 = shalt.err (!%p939_p4)
}
 0x224   : > { %827 = dma.vmem_to_hbm [thread:$0]  (%p1084_p11), %s695_s9, 192, %s697_s21, %s681_s16  }
 0x225 PF: > { %s708_s22 = sand.u32 1, %s969_s24   ;;  %p1262_p7 = scmp.ge.s32.totalorder %s981_s27, 2 }
 0x226   : > { %s709_s18 = scalar_lea.sflag [#allocation4], %s708_s22 }
 0x227   : > { %p834_p5 = pnand %p1262_p7, %p1088_p12 }
 0x229   : > { %p835_p8 = pneg %p834_p5 }
 0x22b   : > { %964 = dma.done.wait (%p835_p8), %s709_s18, 192  }
 0x22c   : > { %966 = vsyncadd (%p835_p8), %s709_s18, 4294967104  ;;  %s1263_s19 = sld [smem:[#allocation8_spill]]  ;;  %p20_p10 = scmp.ge.s32.totalorder %s1059_s30, 4  }
 0x22d   : > { %s1264_s24 = smov %s973_s25  ;;  %s1265_s25 = smov %s977_s26 }
 0x22e   : > { %s1267_s27 = smov %s1059_s30  ;;  %22 = sbr.rel (!%p20_p10) target bundleno = 5 (0x5), region = 93 }
 0x232   : > { %s1266_s26 = smov %s1263_s19 }
 0x233   :  { %715 = vsyncpa [#allocation3], 1 }
 0x234   :  { %717 = vsyncpa [#allocation3 + $0x1], 1 }
 0x235   :  { %718 = vsyncpa [#allocation4], 1 }
 0x236   :  { %720 = vsyncpa [#allocation4 + $0x1], 1 }

</bundles_post_ra>
